<compile_context>
chip_gen: v5e
topology: v5e:2x2
jax: 0.10.0
libtpu: 0.0.40
codegen_flags: <defaults>
</compile_context>

<pallas_src>
import functools
import math

import jax
import jax.numpy as jnp
from jax.experimental import pallas as pl
from jax.experimental.pallas import tpu as pltpu


def _round_up(x, m):
    return ((x + m - 1) // m) * m


# ---------------------------------------------------------------------------
# Kernel 1: row-tiled linear (+ bias, + optional ReLU)
# ---------------------------------------------------------------------------
def _linear_kernel(x_ref, w_ref, b_ref, o_ref, *, activation):
    x = x_ref[...].astype(jnp.float32)
    y = jnp.dot(x, w_ref[...], preferred_element_type=jnp.float32) + b_ref[...]
    if activation == "relu":
        y = jnp.maximum(y, 0.0)
    o_ref[...] = y.astype(o_ref.dtype)


def pallas_linear(x2d, w, b=None, *, activation=None, tm=1024):
    rows, k = x2d.shape
    n = w.shape[1]
    if b is None:
        b = jnp.zeros((n,), jnp.float32)
    b2d = b.reshape(1, n).astype(jnp.float32)

    # Large row tiles; pad rows instead of asserting divisibility.
    tm_eff = min(_round_up(tm, 8), _round_up(rows, 8))
    rows_p = _round_up(rows, tm_eff)
    if rows_p != rows:
        x2d = jnp.pad(x2d, ((0, rows_p - rows), (0, 0)))

    out = pl.pallas_call(
        functools.partial(_linear_kernel, activation=activation),
        out_shape=jax.ShapeDtypeStruct((rows_p, n), jnp.float32),
        grid_spec=pltpu.PrefetchScalarGridSpec(
            num_scalar_prefetch=0,
            grid=(rows_p // tm_eff,),
            in_specs=[
                pl.BlockSpec((tm_eff, k), lambda i: (i, 0)),   # x tile
                pl.BlockSpec((k, n), lambda i: (0, 0)),        # W (VMEM-resident)
                pl.BlockSpec((1, n), lambda i: (0, 0)),        # bias
            ],
            out_specs=pl.BlockSpec((tm_eff, n), lambda i: (i, 0)),
        ),
        compiler_params=pltpu.CompilerParams(dimension_semantics=("parallel",)),
    )(x2d, w, b2d)
    return out[:rows]


# ---------------------------------------------------------------------------
# Kernel 2: per-(batch, head) graph self-attention
# ---------------------------------------------------------------------------
def _attn_kernel(qn_ref, kn_ref, v_ref, qr_ref, kr_ref, mask_ref, *rest,
                 scale, injective, use_route_values):
    if use_route_values:
        vr_ref, o_ref = rest
    else:
        (o_ref,) = rest

    qn = qn_ref[...].astype(jnp.float32)      # (S, dk)
    kn = kn_ref[...].astype(jnp.float32)      # (S, dk)
    v = v_ref[...].astype(jnp.float32)        # (S, dv)
    qr = qr_ref[...].astype(jnp.float32)      # (S, dr)
    kr = kr_ref[...].astype(jnp.float32)      # (S_i, S_j, dr)
    mask = mask_ref[...].astype(jnp.float32)  # (1, S) or (S, S)

    # content score: Qn @ Kn^T
    s_nn = jnp.dot(qn, kn.T, preferred_element_type=jnp.float32)     # (S, S)
    # route score: sum_r Qr[i, r] * Kr[i, j, r]
    s_route = jnp.sum(qr[:, None, :] * kr, axis=-1)                  # (S, S)
    scores = scale * (s_nn + s_route) + mask

    if injective:
        probs = jax.nn.sigmoid(scores)
    else:
        m = jnp.max(scores, axis=-1, keepdims=True)
        e = jnp.exp(scores - m)
        probs = e / jnp.sum(e, axis=-1, keepdims=True)

    ctx = jnp.dot(probs, v, preferred_element_type=jnp.float32)      # (S, dv)
    if use_route_values:
        vr = vr_ref[...].astype(jnp.float32)                         # (S_i, dv, S_j)
        ctx = ctx + jnp.sum(probs[:, None, :] * vr, axis=-1)         # (S, dv)

    o_ref[...] = ctx.astype(o_ref.dtype)


def pallas_graph_attention(qn, kn, v, qr, kr, mask, vr, *, scale, injective):
    b, h, s, dk = qn.shape
    dv = v.shape[-1]
    dr = qr.shape[-1]

    in_specs = [
        pl.BlockSpec((None, None, s, dk), lambda bi, hi: (bi, hi, 0, 0)),
        pl.BlockSpec((None, None, s, dk), lambda bi, hi: (bi, hi, 0, 0)),
        pl.BlockSpec((None, None, s, dv), lambda bi, hi: (bi, hi, 0, 0)),
        pl.BlockSpec((None, None, s, dr), lambda bi, hi: (bi, hi, 0, 0)),
        pl.BlockSpec((None, None, s, s, dr), lambda bi, hi: (bi, hi, 0, 0, 0)),
    ]
    if mask.shape[1] == 1 and mask.shape[2] == 1:       # [B, 1, 1, S]
        in_specs.append(pl.BlockSpec((None, None, 1, s), lambda bi, hi: (bi, 0, 0, 0)))
    else:                                               # [B, heads, S, S]
        in_specs.append(pl.BlockSpec((None, None, s, s), lambda bi, hi: (bi, hi, 0, 0)))

    args = [qn, kn, v, qr, kr, mask]
    use_route_values = vr is not None
    if use_route_values:
        in_specs.append(
            pl.BlockSpec((None, None, s, dv, s), lambda bi, hi: (bi, hi, 0, 0, 0)))
        args.append(vr)

    return pl.pallas_call(
        functools.partial(_attn_kernel, scale=scale, injective=injective,
                          use_route_values=use_route_values),
        out_shape=jax.ShapeDtypeStruct((b, h, s, dv), jnp.float32),
        grid_spec=pltpu.PrefetchScalarGridSpec(
            num_scalar_prefetch=0,
            grid=(b, h),
            in_specs=in_specs,
            out_specs=pl.BlockSpec((None, None, s, dv), lambda bi, hi: (bi, hi, 0, 0)),
        ),
        compiler_params=pltpu.CompilerParams(
            dimension_semantics=("parallel", "parallel")),
    )(*args)


# ---------------------------------------------------------------------------
# Kernel 3: fused Linear + bias + LayerNorm(eps=1e-12) with residual
# ---------------------------------------------------------------------------
def _linear_ln_kernel(x_ref, res_ref, w_ref, p_ref, o_ref, *, eps, residual_outside):
    # p_ref: (3, N) packed [bias; gamma; beta]
    x = x_ref[...].astype(jnp.float32)
    res = res_ref[...].astype(jnp.float32)
    y = jnp.dot(x, w_ref[...], preferred_element_type=jnp.float32) + p_ref[0:1, :]
    if not residual_outside:           # layer_norm(linear(x) + residual)
        y = y + res
    u = jnp.mean(y, axis=-1, keepdims=True)
    d = y - u
    s = jnp.mean(d * d, axis=-1, keepdims=True)
    yn = d * jax.lax.rsqrt(s + eps)    # rsqrt on EUP instead of divide
    out = p_ref[1:2, :] * yn + p_ref[2:3, :]
    if residual_outside:               # layer_norm(linear(x)) + residual
        out = out + res
    o_ref[...] = out.astype(o_ref.dtype)


def pallas_linear_layernorm(x2d, res2d, w, bias, gamma, beta, *,
                            residual_outside, eps=1e-12, tm=1024):
    rows, k = x2d.shape
    n = w.shape[1]
    packed = jnp.stack([bias, gamma, beta], axis=0).astype(jnp.float32)   # (3, N)

    tm_eff = min(_round_up(tm, 8), _round_up(rows, 8))
    rows_p = _round_up(rows, tm_eff)
    if rows_p != rows:
        pad = rows_p - rows
        x2d = jnp.pad(x2d, ((0, pad), (0, 0)))
        res2d = jnp.pad(res2d, ((0, pad), (0, 0)))

    out = pl.pallas_call(
        functools.partial(_linear_ln_kernel, eps=eps,
                          residual_outside=residual_outside),
        out_shape=jax.ShapeDtypeStruct((rows_p, n), jnp.float32),
        grid_spec=pltpu.PrefetchScalarGridSpec(
            num_scalar_prefetch=0,
            grid=(rows_p // tm_eff,),
            in_specs=[
                pl.BlockSpec((tm_eff, k), lambda i: (i, 0)),   # x tile
                pl.BlockSpec((tm_eff, n), lambda i: (i, 0)),   # residual tile
                pl.BlockSpec((k, n), lambda i: (0, 0)),        # W (VMEM-resident)
                pl.BlockSpec((3, n), lambda i: (0, 0)),        # packed bias/gamma/beta
            ],
            out_specs=pl.BlockSpec((tm_eff, n), lambda i: (i, 0)),
        ),
        compiler_params=pltpu.CompilerParams(dimension_semantics=("parallel",)),
    )(x2d, res2d, w, packed)
    return out[:rows]


# ---------------------------------------------------------------------------
# Full GILayer forward
# ---------------------------------------------------------------------------
def gi_layer(H, route_data, attention_mask, params, config):
    B, S, d = H.shape
    h = config["num_heads"]
    dk = config["key_size"]
    dr = config["key_r_size"]
    dv = config["value_size"]
    rsz = config["route_size"]
    total = 2 * dk + dv + dr

    H_flat = H.reshape(B * S, d)

    # --- GraphSelfAttention projections ---
    H2 = pallas_linear(H_flat, params["Ww"])                        # [B*S, h*total]
    H2 = H2.reshape(B, S, h, total).transpose(0, 2, 1, 3)           # [B, h, S, total]
    Qn = H2[..., :dk]
    Kn = H2[..., dk:2 * dk]
    V = H2[..., 2 * dk:2 * dk + dv]
    Qr = H2[..., 2 * dk + dv:]

    route_flat = route_data.reshape(B * S * S, rsz)
    Kr = pallas_linear(route_flat, params["Wd"])                    # [B*S*S, h*dr]
    Kr = Kr.reshape(B, S, S, h, dr).transpose(0, 3, 1, 2, 4)        # [B, h, Si, Sj, dr]
    if config["use_route_values"]:
        Vr = pallas_linear(route_flat, params["Wroute"])            # [B*S*S, h*dv]
        Vr = Vr.reshape(B, S, S, h, dv).transpose(0, 3, 1, 4, 2)    # [B, h, Si, dv, Sj]
    else:
        Vr = None

    scale = 1.0 / math.sqrt(dk + dr)
    ctx = pallas_graph_attention(Qn, Kn, V, Qr, Kr, attention_mask, Vr,
                                 scale=scale, injective=config["injective"])
    ctx = ctx.transpose(0, 2, 1, 3).reshape(B * S, h * dv)          # context_layer

    # --- GraphSelfOutput: Linear + LayerNorm + residual (dropout = identity) ---
    attn_out = pallas_linear_layernorm(
        ctx, H_flat, params["Wo"], params["bo"], params["g1"], params["be1"],
        residual_outside=config["residual"])

    # --- intermediate: Linear + ReLU ---
    inter = pallas_linear(attn_out, params["Wi"], params["bi"], activation="relu")

    # --- GraphOutput: Linear + LayerNorm + residual ---
    layer_out = pallas_linear_layernorm(
        inter, attn_out, params["Wo2"], params["bo2"], params["g2"], params["be2"],
        residual_outside=config["residual"])

    return layer_out.reshape(B, S, d)


# ---------------------------------------------------------------------------
# Pure-JAX reference (mirrors the PyTorch module in eval mode)
# ---------------------------------------------------------------------------
def _layer_norm_ref(x, g, b, eps=1e-12):
    u = x.mean(-1, keepdims=True)
    s = ((x - u) ** 2).mean(-1, keepdims=True)
    return g * (x - u) / jnp.sqrt(s + eps) + b


def _reference_gi_layer(H, route_data, attention_mask, p, cfg):
    P = jax.lax.Precision.HIGHEST
    B, S, d = H.shape
    h, dk, dr, dv = cfg["num_heads"], cfg["key_size"], cfg["key_r_size"], cfg["value_size"]
    total = 2 * dk + dv + dr

    H2 = jnp.matmul(H, p["Ww"], precision=P).reshape(B, S, h, total).transpose(0, 2, 1, 3)
    Qn, Kn, V, Qr = (H2[..., :dk], H2[..., dk:2 * dk],
                     H2[..., 2 * dk:2 * dk + dv], H2[..., 2 * dk + dv:])
    Kr = jnp.matmul(route_data, p["Wd"], precision=P)
    Kr = Kr.reshape(B, S, S, h, dr).transpose(0, 3, 1, 4, 2)         # [B,h,Si,dr,Sj]
    QKr = jnp.einsum('bhir,bhirj->bhij', Qr, Kr, precision=P)
    scale = 1.0 / math.sqrt(dk + dr)
    scores = scale * (jnp.einsum('bhid,bhjd->bhij', Qn, Kn, precision=P) + QKr) + attention_mask
    probs = jax.nn.sigmoid(scores) if cfg["injective"] else jax.nn.softmax(scores, axis=-1)
    ctx = jnp.einsum('bhij,bhjv->bhiv', probs, V, precision=P)
    if cfg["use_route_values"]:
        Vr = jnp.matmul(route_data, p["Wroute"], precision=P)
        Vr = Vr.reshape(B, S, S, h, dv).transpose(0, 3, 1, 2, 4)     # [B,h,Si,Sj,dv]
        ctx = ctx + jnp.einsum('bhij,bhijv->bhiv', probs, Vr, precision=P)
    ctx = ctx.transpose(0, 2, 1, 3).reshape(B, S, h * dv)

    Ho = jnp.matmul(ctx, p["Wo"], precision=P) + p["bo"]
    if cfg["residual"]:
        attn_out = _layer_norm_ref(Ho, p["g1"], p["be1"]) + H
    else:
        attn_out = _layer_norm_ref(Ho + H, p["g1"], p["be1"])
    inter = jax.nn.relu(jnp.matmul(attn_out, p["Wi"], precision=P) + p["bi"])
    Ho2 = jnp.matmul(inter, p["Wo2"], precision=P) + p["bo2"]
    if cfg["residual"]:
        out = _layer_norm_ref(Ho2, p["g2"], p["be2"]) + attn_out
    else:
        out = _layer_norm_ref(Ho2 + attn_out, p["g2"], p["be2"])
    return out


if __name__ == "__main__":
    cfg = dict(num_heads=4, key_size=8, key_r_size=4, value_size=8,
               hidden_size=32, route_size=16, intermediate_size=64,
               injective=False, use_route_values=True, residual=True)

    B, S = 2, 8
    d = cfg["hidden_size"]
    h, dk, dr, dv = cfg["num_heads"], cfg["key_size"], cfg["key_r_size"], cfg["value_size"]
    rsz, di = cfg["route_size"], cfg["intermediate_size"]
    total = 2 * dk + dv + dr

    key = jax.random.PRNGKey(0)
    keys = jax.random.split(key, 12)

    H = jax.random.normal(keys[0], (B, S, d), jnp.float32)
    route_data = jax.random.normal(keys[1], (B, S, S, rsz), jnp.float32)
    mask_bits = jax.random.uniform(keys[2], (B, 1, 1, S)) < 0.15
    attention_mask = jnp.where(mask_bits, -10000.0, 0.0).astype(jnp.float32)

    def uniform(k, shape, fan_in):
        lim = 1.0 / math.sqrt(fan_in)
        return jax.random.uniform(k, shape, jnp.float32, -lim, lim)

    params = dict(
        Ww=uniform(keys[3], (d, h * total), d),          # W (no bias)
        Wd=uniform(keys[4], (rsz, h * dr), rsz),         # Wd (no bias)
        Wroute=uniform(keys[5], (rsz, h * dv), rsz),     # Wroute (no bias)
        Wo=uniform(keys[6], (h * dv, d), h * dv),        # GraphSelfOutput.linear
        bo=uniform(keys[7], (d,), h * dv),
        g1=jnp.ones((d,), jnp.float32),
        be1=jnp.zeros((d,), jnp.float32),
        Wi=uniform(keys[8], (d, di), d),                 # intermediate Linear
        bi=uniform(keys[9], (di,), d),
        Wo2=uniform(keys[10], (di, d), di),              # GraphOutput.linear
        bo2=uniform(keys[11], (d,), di),
        g2=jnp.ones((d,), jnp.float32),
        be2=jnp.zeros((d,), jnp.float32),
    )

    out = gi_layer(H, route_data, attention_mask, params, cfg)
    out = jax.block_until_ready(out)

    ref = _reference_gi_layer(H, route_data, attention_mask, params, cfg)
    assert out.shape == (B, S, d)
    max_err = float(jnp.max(jnp.abs(out - ref)))
    assert jnp.allclose(out, ref, rtol=2e-3, atol=2e-3), \
        f"mismatch vs reference (max abs err {max_err})"

    print("KERNEL_OK")
</pallas_src>

<mosaic_0001>
module attributes {stable_mosaic.version = 11 : i64} {
  func.func @_linear_kernel(%arg0: i32, %arg1: memref<16x32xf32, #tpu.memory_space<vmem>>, %arg2: memref<32x112xf32, #tpu.memory_space<vmem>>, %arg3: memref<1x112xf32, #tpu.memory_space<vmem>>, %arg4: memref<16x112xf32, #tpu.memory_space<vmem>>) attributes {dimension_semantics = [#tpu.dimension_semantics<parallel>], iteration_bounds = array<i64: 1>, scalar_prefetch = 0 : i64, scratch_operands = 0 : i64, tpu.core_type = #tpu.core_type<tc>, window_params = [{transform_indices = @transform_0, window_bounds = array<i64: 16, 32>}, {pipeline_mode = #tpu.pipeline_mode<synchronous>, transform_indices = @transform_1, window_bounds = array<i64: 32, 112>}, {pipeline_mode = #tpu.pipeline_mode<synchronous>, transform_indices = @transform_2, window_bounds = array<i64: 1, 112>}, {transform_indices = @transform_3, window_bounds = array<i64: 16, 112>}]} {
    %c0 = arith.constant 0 : index
    %c0_0 = arith.constant 0 : index
    %0 = vector.load %arg1[%c0, %c0_0] : memref<16x32xf32, #tpu.memory_space<vmem>>, vector<16x32xf32>
    %c0_1 = arith.constant 0 : index
    %c0_2 = arith.constant 0 : index
    %1 = vector.load %arg2[%c0_1, %c0_2] : memref<32x112xf32, #tpu.memory_space<vmem>>, vector<32x112xf32>
    %cst = arith.constant dense<0.000000e+00> : vector<16x112xf32>
    %2 = tpu.matmul %0, %1, %cst {dimension_numbers = #tpu.dot_dimension_numbers<[1], [0], [0], [1], [0, 0, 1, 1], [], []>} : vector<16x32xf32>, vector<32x112xf32>, vector<16x112xf32> -> vector<16x112xf32>
    %c0_3 = arith.constant 0 : index
    %c0_4 = arith.constant 0 : index
    %3 = vector.load %arg3[%c0_3, %c0_4] : memref<1x112xf32, #tpu.memory_space<vmem>>, vector<1x112xf32>
    %4 = vector.broadcast %3 : vector<1x112xf32> to vector<16x112xf32>
    %5 = arith.addf %2, %4 : vector<16x112xf32>
    %c0_5 = arith.constant 0 : index
    %c0_6 = arith.constant 0 : index
    %6 = vector.load %arg4[%c0_5, %c0_6] : memref<16x112xf32, #tpu.memory_space<vmem>>, vector<16x112xf32>
    tpu.vector_store %arg4[%c0_5, %c0_6], %5 {strides = array<i32>} : memref<16x112xf32, #tpu.memory_space<vmem>>, vector<16x112xf32>,
    return
  }
  func.func @transform_0(%arg0: i32) -> (i32, i32) {
    %c0_i32 = arith.constant 0 : i32
    %c0_i32_0 = arith.constant 0 : i32
    return %arg0, %c0_i32 : i32, i32
  }
  func.func @transform_1(%arg0: i32) -> (i32, i32) {
    %c0_i32 = arith.constant 0 : i32
    %c0_i32_0 = arith.constant 0 : i32
    %c0_i32_1 = arith.constant 0 : i32
    return %c0_i32, %c0_i32_0 : i32, i32
  }
  func.func @transform_2(%arg0: i32) -> (i32, i32) {
    %c0_i32 = arith.constant 0 : i32
    %c0_i32_0 = arith.constant 0 : i32
    %c0_i32_1 = arith.constant 0 : i32
    return %c0_i32, %c0_i32_0 : i32, i32
  }
  func.func @transform_3(%arg0: i32) -> (i32, i32) {
    %c0_i32 = arith.constant 0 : i32
    %c0_i32_0 = arith.constant 0 : i32
    return %arg0, %c0_i32 : i32, i32
  }
}

</mosaic_0001>

<bundles_post_ra>
// kernel: tpu_custom_call.1
= control target key start
LH: loop header
LB: loop body
LE: loop exit
PB: predicated region body
PF: predicated region fallthrough
CT: control target
= control target key end

     0   :  { %8 = vsyncpa [#allocation3], 0  ;;  %s246_s0 = inlined_call_operand.hbm [shape: f32[16,32], index: 0, kind: input, shape index: {}]   ;;  %s247_s1 = inlined_call_operand.hbm [shape: f32[32,112], index: 1, kind: input, shape index: {}]   ;;  %s248_s2 = inlined_call_operand.vmem [shape: f32[1,112], index: 2, kind: input, shape index: {}]   ;;  %s249_s3 = inlined_call_operand.hbm [shape: f32[16,112], index: 3, kind: output, shape index: {}]  }
   0x1   :  { %9 = vsyncpa [#allocation6], 0 }
   0x2   :  { %10 = vsyncpa [#allocation4], 0  ;;  %s15_s14 = sshll.u32 %s246_s0, 4  ;;  %s200_s15 = smov [#allocation2]   ;;  %s16_s14 = int_to_ptr.hbm [resolvable:$true] %s15_s14 }
   0x3   :  { %s17_s16 = sshll.u32 %s200_s15, 4  ;;  %s28_s19 = sshll.u32 %s247_s1, 4  ;;  %s18_s16 = int_to_ptr.vmem [resolvable:$true] %s17_s16  ;;  %s29_s19 = int_to_ptr.hbm [resolvable:$true] %s28_s19 }
   0x4   :  { %s201_s20 = smov 128   ;;  %s202_s21 = smov 8  }
   0x5   :  { %23 = dma.hbm_to_vmem [thread:$0]  %s16_s14, 256, %s18_s16, [#allocation3], %s201_s20, %s201_s20, %s202_s21  }
   0x6   :  { %s203_s22 = smov [#allocation5]  }
   0x7   :  { %s30_s23 = sshll.u32 %s203_s22, 4  ;;  %s31_s23 = int_to_ptr.vmem [resolvable:$true] %s30_s23 }
   0x8   :  { %36 = dma.hbm_to_vmem [thread:$0]  %s29_s19, 512, %s31_s23, [#allocation6], %s201_s20, %s201_s20, %s202_s21  }
   0x9   :  { %194 = dma.done.wait [#allocation3], 256  }
   0xa   :  { %195 = vsyncadd [#allocation3], 4294967040 }
   0xb   :  { %196 = dma.done.wait [#allocation6], 512  }
   0xc   :  { %197 = vsyncadd [#allocation6], 4294966784  ;;  %v52_v0 = vld [vmem:[#allocation5 + $0x18] sm:$0xff]  ;;  %v51_v1 = vld [vmem:[#allocation5 + $0x10] sm:$0xff]  ;;  %vm57_vm0 = vcmask 261120   ;;  %s204_s24 = smov [#allocation7]  }
   0xd   :  { %76 = vmatpush.msra.mxu0 %v52_v0  ;;  %112 = vmatpush.msra.mxu1 %v52_v0  ;;  %v50_v2 = vld [vmem:[#allocation5 + $0x8] sm:$0xff]  ;;  %v49_v3 = vld [vmem:[#allocation5] sm:$0xff]  ;;  %v47_v4 = vld [vmem:[#allocation2] sm:$0xff]  ;;  %s94_s25 = sshll.u32 %s204_s24, 4  ;;  %s96_s28 = sshll.u32 %s249_s3, 4  ;;  %vm87_vm1 = vcmask 916480   ;;  %s95_s25 = int_to_ptr.vmem [resolvable:$true] %s94_s25  ;;  %s97_s28 = int_to_ptr.hbm [resolvable:$true] %s96_s28 }
   0xe   :  { %v48_v5 = vld [vmem:[#allocation2 + $0x8] sm:$0xff]  ;;  %v121_v6 = vld [vmem:[%s248_s2] ss:$0 sm:$0xff] }
   0xf   :  { %77 = vmatpush.msra.mxu0 %v51_v1  ;;  %113 = vmatpush.msra.mxu1 %v51_v1 }
  0x11   :  { %78 = vmatpush.msra.mxu0 %v50_v2  ;;  %114 = vmatpush.msra.mxu1 %v50_v2 }
  0x13   :  { %79 = vmatpush.msra.mxu0 %v49_v3  ;;  %115 = vmatpush.msra.mxu1 %v49_v3 }
  0x14   :  { %110 = vmatmul.msk.f32.vlgmr.msra.gmra.mxu0 %vm57_vm0, %v47_v4  ;;  %111 = vmatmul.msk.f32.vlgmr.msra.gmra.mxu1 %vm57_vm0, %v48_v5 }
  0x91   :  { %v81_v7 = vpop.f32.mrf.mxu0  ;;  %v84_v8 = vpop.f32.mrf.mxu1 }
  0x92   :  { %v82_v9 = vadd.f32 %v121_v6, %v81_v7  ;;  %v85_v10 = vadd.f32 %v121_v6, %v84_v8 }
  0x94   :  { %88 = vst.msk [vmem:[#allocation7] sm:$0xff] %vm87_vm1, %v82_v9 }
  0x95   :  { %89 = vst.msk [vmem:[#allocation7 + $0x8] sm:$0xff] %vm87_vm1, %v85_v10 }
  0x96   :  { %102 = dma.vmem_to_hbm [thread:$0]  %s95_s25, 256, %s97_s28, [#allocation4], %s201_s20, %s201_s20, %s202_s21  }
  0x97   :  { %198 = dma.done.wait [#allocation4], 256  }
  0x98   :  { %199 = vsyncadd [#allocation4], 4294967040 }
  0x99   :  { %107 = vsyncpa [#allocation3], 1 }
  0x9a   :  { %108 = vsyncpa [#allocation6], 1 }
  0x9b   :  { %109 = vsyncpa [#allocation4], 1 }

</bundles_post_ra>
